<compile_context>
chip_gen: v7x
topology: tpu7x:2x2x1
jax: 0.10.0
libtpu: 0.0.40
codegen_flags: <defaults>
</compile_context>

<pallas_src>
import jax
import jax.numpy as jnp
from jax.experimental import pallas as pl
from jax.experimental.pallas import tpu as pltpu


def _round_up(x, m):
    return (x + m - 1) // m * m


def _symmetric_linear_kernel(scale_ref, x_ref, w_ref, b_ref, o_ref):
    # scale_ref: SMEM f32[1]         (scalar-prefetch: dequant scaling factor)
    # x_ref:     VMEM bf16[tm, tk]   (input tile, already bf16 from the wrapper)
    # w_ref:     VMEM int8[tn, tk]   (quantized weight tile, torch (out, in) layout)
    # b_ref:     VMEM f32[1, tn]     (bias tile)
    # o_ref:     VMEM f32[tm, tn]    (output tile; resident across k -> doubles as accumulator)
    k = pl.program_id(2)

    @pl.when(k == 0)
    def _():
        o_ref[...] = jnp.zeros_like(o_ref)

    # int8 -> bf16 is exact (|w| <= 127).  Contracting the last axis of both tiles feeds the
    # MXU directly with no transpose: (tm,tk) x (tn,tk) -> (tm,tn), f32 accumulation.
    o_ref[...] += jax.lax.dot_general(
        x_ref[...],
        w_ref[...].astype(jnp.bfloat16),
        dimension_numbers=(((1,), (1,)), ((), ())),
        preferred_element_type=jnp.float32,
    )

    @pl.when(k == pl.num_programs(2) - 1)
    def _():
        # Fused dequant-scale + bias on the finalized accumulator.
        o_ref[...] = o_ref[...] * scale_ref[0] + b_ref[...]


def quantize_symmetric(weight, palette_size=255):
    """Mirror of SymmetricLinear.__init__ quantization math."""
    assert palette_size < 256, "weights stored in int8; larger palettes would flip signs"
    signed_palette_size = palette_size // 2
    max_abs = jnp.max(jnp.abs(weight))
    # Guard the all-zero-weight edge case (avoid divide-by-zero -> NaN weights).
    scaling_factor = jnp.maximum(max_abs / signed_palette_size, jnp.finfo(jnp.float32).tiny)
    scaled = jnp.round(jnp.clip(weight, -max_abs, max_abs) / scaling_factor)
    return scaled.astype(jnp.int8), scaling_factor.astype(jnp.float32)


def prepare_symmetric_linear(weight, bias=None, *, palette_size=255, tn=None, tk=None):
    """Init-time work (quantize + tile-pad weight/bias ONCE), mirroring __init__.

    weight: (N, K) f32 in torch nn.Linear layout; bias: (N,) f32 or None.
    Returns a params dict consumed by symmetric_linear_forward.
    """
    N, K = weight.shape
    # 256-aligned tiles by default (v6e/v7x MXUs are 2x256x256); clip to the (padded) dims.
    if tn is None:
        tn = min(256, _round_up(N, 128))
    if tk is None:
        tk = min(512, _round_up(K, 128))

    w_int8, scale = quantize_symmetric(weight, palette_size)

    Np, Kp = _round_up(N, tn), _round_up(K, tk)
    w_p = jnp.pad(w_int8, ((0, Np - N), (0, Kp - K))) if (Np, Kp) != (N, K) else w_int8
    b = jnp.zeros((N,), jnp.float32) if bias is None else jnp.asarray(bias, jnp.float32)
    b_p = jnp.pad(b, (0, Np - N)).reshape(1, Np)

    return dict(
        w=w_p,                                  # (Np, Kp) int8, tile-padded once
        b=b_p,                                  # (1, Np) f32, tile-padded once
        scale=jnp.reshape(scale, (1,)),         # (1,) f32 -> SMEM scalar prefetch
        n_out=N,
        n_in=K,
        tn=tn,
        tk=tk,
    )


def symmetric_linear_forward(x, params, *, tm=None):
    """Pallas forward for SymmetricLinear: y = x @ (scale * W_int8)^T + bias.

    x: (M, K) float; params: output of prepare_symmetric_linear.  Returns (M, N) f32.
    """
    w_p, b_p, scale = params["w"], params["b"], params["scale"]
    N, K = params["n_out"], params["n_in"]
    tn, tk = params["tn"], params["tk"]
    Np, Kp = w_p.shape

    M = x.shape[0]
    assert x.shape[1] == K, "in_features mismatch between input and weight"
    if tm is None:
        tm = min(_round_up(M, 16), 256)   # multiple of 16 for bf16 sublane packing
    Mp = _round_up(M, tm)

    # Only the (cheap) activation is padded per call; weight/bias were padded at init.
    x_bf16 = jnp.asarray(x, jnp.bfloat16)
    x_p = jnp.pad(x_bf16, ((0, Mp - M), (0, Kp - K))) if (Mp, Kp) != (M, K) else x_bf16

    grid = (Mp // tm, Np // tn, Kp // tk)

    out = pl.pallas_call(
        _symmetric_linear_kernel,
        out_shape=jax.ShapeDtypeStruct((Mp, Np), jnp.float32),
        grid_spec=pltpu.PrefetchScalarGridSpec(
            num_scalar_prefetch=1,                                   # scaling factor -> SMEM
            grid=grid,
            in_specs=[
                pl.BlockSpec((tm, tk), lambda i, j, k, s: (i, k)),   # bf16 x tile
                # int8 weight stays 1 byte/elem through HBM->VMEM; add
                # pipeline_mode=pl.Buffered(3) here if profiling shows exposed weight DMA.
                pl.BlockSpec((tn, tk), lambda i, j, k, s: (j, k)),
                pl.BlockSpec((1, tn), lambda i, j, k, s: (0, j)),    # bias tile
            ],
            out_specs=pl.BlockSpec((tm, tn), lambda i, j, k, s: (i, j)),
        ),
        compiler_params=pltpu.CompilerParams(
            dimension_semantics=("parallel", "parallel", "arbitrary"),
        ),
        cost_estimate=pl.CostEstimate(
            flops=2 * Mp * Np * Kp,
            transcendentals=0,
            bytes_accessed=Mp * Kp * 2 + Np * Kp * 1 + Mp * Np * 4 + Np * 4,
        ),
    )(scale, x_p, w_p, b_p)

    return out[:M, :N]


if __name__ == "__main__":
    key = jax.random.PRNGKey(0)
    k_w, k_b, k_x = jax.random.split(key, 3)

    batch, in_features, out_features = 8, 256, 512

    # Deterministic "pretrained" float weights/bias (what __init__ receives).
    weight_f32 = jax.random.normal(k_w, (out_features, in_features), jnp.float32)
    bias_f32 = jax.random.normal(k_b, (out_features,), jnp.float32)
    x = jax.random.normal(k_x, (batch, in_features), jnp.float32)

    # __init__: quantize symmetrically to int8 + scalar scaling factor; pad once for tiling.
    params = prepare_symmetric_linear(weight_f32, bias_f32, palette_size=255)

    # forward: int8-weight matmul + fused scale-and-bias finalize, inside the Pallas kernel.
    out = symmetric_linear_forward(x, params)
    out = jax.block_until_ready(out)

    # Reference of the same forward math (f32 dequant + F.linear).  The kernel feeds the MXU
    # bf16 operands with f32 accumulation, so allow a small numerical tolerance.
    scale = params["scale"][0]
    w_int8 = params["w"][:out_features, :in_features]
    ref = x @ (w_int8.astype(jnp.float32) * scale).T + bias_f32
    assert out.shape == (batch, out_features)
    assert jnp.allclose(out, ref, rtol=2e-2, atol=2e-1), float(jnp.max(jnp.abs(out - ref)))

    print("KERNEL_OK")
</pallas_src>

<mosaic_0001>
module attributes {stable_mosaic.version = 11 : i64} {
  func.func @_symmetric_linear_kernel(%arg0: i32, %arg1: i32, %arg2: i32, %arg3: memref<1xf32, #tpu.memory_space<smem>>, %arg4: memref<16x256xbf16, #tpu.memory_space<vmem>>, %arg5: memref<256x256xi8, #tpu.memory_space<vmem>>, %arg6: memref<1x256xf32, #tpu.memory_space<vmem>>, %arg7: memref<16x256xf32, #tpu.memory_space<vmem>>) attributes {dimension_semantics = [#tpu.dimension_semantics<parallel>, #tpu.dimension_semantics<parallel>, #tpu.dimension_semantics<arbitrary>], iteration_bounds = array<i64: 1, 2, 1>, scalar_prefetch = 1 : i64, scratch_operands = 0 : i64, tpu.core_type = #tpu.core_type<tc>, window_params = [{transform_indices = @transform_0, window_bounds = array<i64: 16, 256>}, {transform_indices = @transform_1, window_bounds = array<i64: 256, 256>}, {transform_indices = @transform_2, window_bounds = array<i64: 1, 256>}, {transform_indices = @transform_3, window_bounds = array<i64: 16, 256>}]} {
    %c0_i32 = arith.constant 0 : i32
    %0 = arith.cmpi eq, %arg2, %c0_i32 : i32
    %1 = arith.extui %0 : i1 to i32
    %c0_i32_0 = arith.constant 0 : i32
    %2 = arith.cmpi ne, %1, %c0_i32_0 : i32
    scf.if %2 {
      %cst_10 = arith.constant 0.000000e+00 : f32
      %13 = vector.broadcast %cst_10 : f32 to vector<16x256xf32>
      %c0_11 = arith.constant 0 : index
      %c0_12 = arith.constant 0 : index
      %14 = vector.load %arg7[%c0_11, %c0_12] : memref<16x256xf32, #tpu.memory_space<vmem>>, vector<16x256xf32>
      tpu.vector_store %arg7[%c0_11, %c0_12], %13 {strides = array<i32>} : memref<16x256xf32, #tpu.memory_space<vmem>>, vector<16x256xf32>,
    } else {
    }
    %c0 = arith.constant 0 : index
    %c0_1 = arith.constant 0 : index
    %3 = vector.load %arg7[%c0, %c0_1] : memref<16x256xf32, #tpu.memory_space<vmem>>, vector<16x256xf32>
    %c0_2 = arith.constant 0 : index
    %c0_3 = arith.constant 0 : index
    %4 = vector.load %arg4[%c0_2, %c0_3] : memref<16x256xbf16, #tpu.memory_space<vmem>>, vector<16x256xbf16>
    %c0_4 = arith.constant 0 : index
    %c0_5 = arith.constant 0 : index
    %5 = vector.load %arg5[%c0_4, %c0_5] : memref<256x256xi8, #tpu.memory_space<vmem>>, vector<256x256xi8>
    %6 = arith.sitofp %5 : vector<256x256xi8> to vector<256x256xbf16>
    %cst = arith.constant dense<0.000000e+00> : vector<16x256xf32>
    %7 = tpu.matmul %4, %6, %cst {dimension_numbers = #tpu.dot_dimension_numbers<[1], [1], [0], [0], [0, 0, 1, 0], [], []>} : vector<16x256xbf16>, vector<256x256xbf16>, vector<16x256xf32> -> vector<16x256xf32>
    %8 = arith.addf %3, %7 : vector<16x256xf32>
    %c0_6 = arith.constant 0 : index
    %c0_7 = arith.constant 0 : index
    %9 = vector.load %arg7[%c0_6, %c0_7] : memref<16x256xf32, #tpu.memory_space<vmem>>, vector<16x256xf32>
    tpu.vector_store %arg7[%c0_6, %c0_7], %8 {strides = array<i32>} : memref<16x256xf32, #tpu.memory_space<vmem>>, vector<16x256xf32>,
    %c0_i32_8 = arith.constant 0 : i32
    %10 = arith.cmpi eq, %arg2, %c0_i32_8 : i32
    %11 = arith.extui %10 : i1 to i32
    %c0_i32_9 = arith.constant 0 : i32
    %12 = arith.cmpi ne, %11, %c0_i32_9 : i32
    scf.if %12 {
      %c0_10 = arith.constant 0 : index
      %c0_11 = arith.constant 0 : index
      %13 = vector.load %arg7[%c0_10, %c0_11] : memref<16x256xf32, #tpu.memory_space<vmem>>, vector<16x256xf32>
      %c0_12 = arith.constant 0 : index
      %14 = memref.load %arg3[%c0_12] : memref<1xf32, #tpu.memory_space<smem>>
      %15 = vector.broadcast %14 : f32 to vector<16x256xf32>
      %16 = arith.mulf %13, %15 : vector<16x256xf32>
      %c0_13 = arith.constant 0 : index
      %c0_14 = arith.constant 0 : index
      %17 = vector.load %arg6[%c0_13, %c0_14] : memref<1x256xf32, #tpu.memory_space<vmem>>, vector<1x256xf32>
      %18 = vector.broadcast %17 : vector<1x256xf32> to vector<16x256xf32>
      %19 = arith.addf %16, %18 : vector<16x256xf32>
      %c0_15 = arith.constant 0 : index
      %c0_16 = arith.constant 0 : index
      %20 = vector.load %arg7[%c0_15, %c0_16] : memref<16x256xf32, #tpu.memory_space<vmem>>, vector<16x256xf32>
      tpu.vector_store %arg7[%c0_15, %c0_16], %19 {strides = array<i32>} : memref<16x256xf32, #tpu.memory_space<vmem>>, vector<16x256xf32>,
    } else {
    }
    return
  }
  func.func @transform_0(%arg0: i32, %arg1: i32, %arg2: i32, %arg3: memref<1xf32, #tpu.memory_space<smem>>) -> (i32, i32) {
    %c0_i32 = arith.constant 0 : i32
    return %arg0, %arg2 : i32, i32
  }
  func.func @transform_1(%arg0: i32, %arg1: i32, %arg2: i32, %arg3: memref<1xf32, #tpu.memory_space<smem>>) -> (i32, i32) {
    %c0_i32 = arith.constant 0 : i32
    return %arg1, %arg2 : i32, i32
  }
  func.func @transform_2(%arg0: i32, %arg1: i32, %arg2: i32, %arg3: memref<1xf32, #tpu.memory_space<smem>>) -> (i32, i32) {
    %c0_i32 = arith.constant 0 : i32
    %c0_i32_0 = arith.constant 0 : i32
    return %c0_i32, %arg1 : i32, i32
  }
  func.func @transform_3(%arg0: i32, %arg1: i32, %arg2: i32, %arg3: memref<1xf32, #tpu.memory_space<smem>>) -> (i32, i32) {
    %c0_i32 = arith.constant 0 : i32
    return %arg0, %arg1 : i32, i32
  }
}

</mosaic_0001>

<bundles_post_ra>
// kernel: tpu_custom_call.1
= control target key start
LH: loop header
LB: loop body
LE: loop exit
PB: predicated region body
PF: predicated region fallthrough
CT: control target
= control target key end

     0   :  { %s1093_s0 = inlined_call_operand.<no memory space> [shape: f32[1], index: 0, kind: input, shape index: {}]   ;;  %s1094_s1 = inlined_call_operand.hbm [shape: bf16[16,256], index: 1, kind: input, shape index: {}]   ;;  %s1095_s2 = inlined_call_operand.hbm [shape: s8[512,256], index: 2, kind: input, shape index: {}]   ;;  %s1096_s3 = inlined_call_operand.vmem [shape: f32[1,512], index: 3, kind: input, shape index: {}]   ;;  %s1097_s4 = inlined_call_operand.hbm [shape: f32[16,512], index: 4, kind: output, shape index: {}]  }
   0x1   :  { %9 = sst [smem:[#allocation3]] %s1093_s0 }
   0x2   :  { %10 = vsyncpa [#allocation5], 0 }
   0x3   :  { %11 = vsyncpa [#allocation8], 0 }
   0x4   :  { %13 = vsyncpa [#allocation8 + $0x1], 0 }
   0x5   :  { %14 = vsyncpa [#allocation6], 0 }
   0x6   :  { %16 = vsyncpa [#allocation6 + $0x1], 0  ;;  %s851_s17 = smov 0   ;;  %s853_s18 = smov 0  }
   0x7   :  { %s855_s19 = smov 0   ;;  %s857_s20 = smov 0  }
   0x8   :  { %s859_s21 = smov 0   ;;  %s861_s22 = smov 0  }
   0x9 LB: > { %s559_s0 = sadd.s32 4294967295, %s811_s22   ;;  %s560_s23 = sadd.s32 4294967294, %s811_s22   ;;  %s811_s22 = sphi %s861_s22, %s22_s22   ;;  %s807_s21 = sphi %s859_s21, %s1121_s21   ;;  %s803_s20 = sphi %s857_s20, %s1120_s20   ;;  %s799_s19 = sphi %s855_s19, %s1119_s19   ;;  %s795_s18 = sphi %s853_s18, %s1118_s18   ;;  %s791_s17 = sphi %s851_s17, %s1117_s17  }
   0xa   : > { %p91_p0 = scmp.ne.s32.totalorder %s795_s18, %s791_s17  ;;  %p885_p1 = scmp.eq.s32.totalorder %s559_s0, 0 }
   0xb   : > { %p889_p2 = scmp.eq.s32.totalorder %s559_s0, 1  ;;  %p149_p3 = scmp.eq.s32.totalorder %s560_s23, 1 }
   0xc   : > { %s1102_s24 = scalar_select %p885_p1, 1, 0 }
   0xd   : > { %s1103_s25 = scalar_select %p889_p2, 1, 0 }
   0xe   : > { %p895_p4 = por %p885_p1, %p91_p0  ;;  %p561_p5 = scmp.ge.s32.totalorder %s811_s22, 1 }
   0xf   : > { %p900_p6 = por %p149_p3, %p91_p0  ;;  %p156_p7 = scmp.lt.s32.totalorder %s811_s22, 3 }
  0x10   : > { %s1104_s26 = scalar_select %p895_p4, 1, 0 }
  0x11   : > { %s1105_s27 = scalar_select %p900_p6, 1, 0 }
  0x12   : > { %p905_p8 = pnand %p561_p5, %p156_p7  ;;  %s813_s29 = smov [#allocation4]  }
  0x13   : > { %s174_s30 = sshll.u32 %s813_s29, 4  ;;  %s37_s6 = sadd.s32 1, %s807_s21  ;;  %s175_s30 = int_to_ptr.vmem [resolvable:$true] %s174_s30 }
  0x14   : > { %s1106_s28 = scalar_select %p905_p8, 1, 0 }
  0x15   : > { %p591_p9 = pneg %p905_p8  ;;  %s667_s9 = scalar_lea.hbm %s1094_s1, 256 }
  0x16   : > { %p668_p12 = scmp.ne.s32.totalorder %s1094_s1, %s667_s9  ;;  %p674_p5 = scmp.lt.u32.totalorder %s667_s9, %s1094_s1 }
  0x17   : > { %p914_p11 = pnand %p591_p9, %p885_p1 }
  0x19   : > { %p669_p13 = pneg %p914_p11 }
  0x1b   : > { %p670_p0 = pnand %p669_p13, %p668_p12 }
  0x1d   : > { %p671_p3 = pneg %p670_p0 }
  0x1f   : > { %p676_p7 = pnand %p674_p5, %p671_p3 }
  0x21   : > { %679 = shalt.err (!%p676_p7)
}
  0x22   : > { %s680_s14 = scalar_lea.vmem %s175_s30, 256  ;;  %p688_p4 = scmp.lt.s32.totalorder %s175_s30, %s175_s30 }
  0x23   : > { %p681_p9 = scmp.ne.s32.totalorder %s175_s30, %s680_s14  ;;  %p689_p1 = scmp.lt.s32.totalorder %s680_s14, %s680_s14 }
  0x25   : > { %p683_p10 = pnand %p681_p9, %p669_p13  ;;  %p690_p8 = por %p689_p1, %p688_p4 }
  0x27   : > { %p684_p6 = pneg %p683_p10 }
  0x29   : > { %p691_p2 = pnand %p690_p8, %p684_p6 }
  0x2b   : > { %694 = shalt.err (!%p691_p2)
}
  0x2c   : > { %s814_s15 = smov 128   ;;  %s815_s16 = smov 8  }
  0x2d   : > { %594 = dma.hbm_to_vmem [thread:$0]  (!%p914_p11), %s1094_s1, 256, %s175_s30, [#allocation5], %s814_s15, %s814_s15, %s815_s16  }
  0x2e   : > { %p39_p1 = scmp.ge.s32.totalorder %s37_s6, 2  ;;  %s78_s29 = sadd.s32 1, %s799_s19 }
  0x2f   : > { %p85_p2 = scmp.ne.s32.totalorder %s799_s19, %s795_s18  ;;  %p86_p4 = scmp.eq.s32.totalorder %s811_s22, 0 }
  0x30   : > { %s1123_s6 = smov (%p39_p1, %s37_s6), 0  ;;  %p1109_p8 = scmp.ne.s32.totalorder %s1103_s25, 0 }
  0x31   : > { %p941_p6 = por %p86_p4, %p85_p2  ;;  %s73_s5 = ssub.s32 %s807_s21, %s1123_s6 }
  0x32   : > { %p947_p10 = por %p1109_p8, %p85_p2  ;;  %p604_p12 = scmp.lt.s32.totalorder %s811_s22, 2 }
  0x33   : > { %p76_p11 = scmp.eq.s32.totalorder %s73_s5, 0  ;;  %s188_s30 = sand.u32 1, %s799_s19  }
  0x34   : > { %s564_s9 = sshll.u32 %s188_s30, 7  ;;  %s581_s11 = sshll.u32 %s807_s21, 11 }
  0x35   : > { %s956_s10 = scalar_select %p76_p11, %s799_s19, %s78_s29  }
  0x36   : > { %s962_s14 = scalar_lea.hbm %s1095_s2, %s581_s11  ;;  %s192_s25 = scalar_lea.vmem [#allocation7], %s564_s9 }
  0x37   : > { %s202_s15 = sshll.u32 %s192_s25, 4  ;;  %p968_p13 = pnand %p604_p12, %p941_p6  ;;  %s964_s15 = int_to_ptr.vmem [resolvable:$true] %s202_s15 }
  0x38   : > { %s972_s0 = scalar_lea.sflag [#allocation8], %s188_s30  ;;  %s695_s23 = scalar_lea.hbm %s962_s14, 2048 }
  0x39   : > { %p696_p0 = scmp.ne.s32.totalorder %s962_s14, %s695_s23  ;;  %p697_p3 = pneg %p968_p13 }
  0x3a   : > { %s700_s7 = scalar_lea.hbm %s1095_s2, 4096  ;;  %p701_p9 = scmp.lt.u32.totalorder %s962_s14, %s1095_s2 }
  0x3b   : > { %p698_p5 = pnand %p697_p3, %p696_p0  ;;  %p702_p1 = scmp.lt.u32.totalorder %s700_s7, %s695_s23 }
  0x3c   : > { %p704_p4 = scmp.lt.u32.totalorder %s695_s23, %s962_s14 }
  0x3d   : > { %p699_p7 = pneg %p698_p5  ;;  %p703_p2 = por %p702_p1, %p701_p9 }
  0x3f   : > { %p705_p6 = por %p704_p4, %p703_p2 }
  0x41   : > { %p706_p8 = pnand %p705_p6, %p699_p7 }
  0x43   : > { %709 = shalt.err (!%p706_p8)
}
  0x44   : > { %s710_s30 = scalar_lea.vmem %s964_s15, 2048  ;;  %s816_s12 = smov [#allocation7]  }
  0x45   : > { %p711_p12 = scmp.ne.s32.totalorder %s964_s15, %s710_s30  ;;  %s715_s13 = sshll.u32 %s816_s12, 4  ;;  %s716_s13 = int_to_ptr.vmem [resolvable:$false] %s715_s13 }
  0x46   : > { %s717_s25 = scalar_lea.vmem %s716_s13, 4096  ;;  %p718_p5 = scmp.lt.s32.totalorder %s964_s15, %s716_s13 }
  0x47   : > { %p713_p11 = pnand %p711_p12, %p697_p3  ;;  %p719_p9 = scmp.lt.s32.totalorder %s717_s25, %s710_s30 }
  0x49   : > { %p714_p0 = pneg %p713_p11  ;;  %p720_p1 = por %p719_p9, %p718_p5 }
  0x4b   : > { %p721_p2 = pnand %p720_p1, %p714_p0 }
  0x4d   : > { %724 = shalt.err (!%p721_p2)
}
  0x4e   : > { %s817_s23 = smov 256   ;;  %s818_s29 = smov 16  }
  0x4f   : > { %598 = dma.hbm_to_vmem [thread:$0]  (!%p968_p13), %s962_s14, 2048, %s964_s15, %s972_s0, %s817_s23, %s817_s23, %s818_s29  }
  0x50   : > { %p1112_p3 = scmp.ne.s32.totalorder %s1106_s28, 0 }
  0x51   : > { %p1113_p7 = scmp.ne.s32.totalorder (!%p1112_p3), %s1102_s24, 0 }
  0x52   : > { %222 = sbr.rel (%p1112_p3) target bundleno = 460 (0x1cc), region = 32 }
  0x59   : > { %778 = dma.done.wait (%p1113_p7), [#allocation5], 256  }
  0x5a   : > { %780 = vsyncadd (%p1113_p7), [#allocation5], 4294967040  ;;  %s1007_s5 = sand.u32 1, %s795_s18   ;;  %p1114_p13 = scmp.ne.s32.totalorder %s1104_s26, 0 }
  0x5b   : > { %s570_s7 = sshll.u32 %s1007_s5, 7  ;;  %s229_s9 = scalar_lea.sflag [#allocation8], %s1007_s5 }
  0x5c   : > { %s1011_s11 = scalar_lea.vmem [#allocation7], %s570_s7 }
  0x5d   : > { %782 = dma.done.wait (%p1114_p13), %s229_s9, 2048  }
  0x5e   : > { %784 = vsyncadd (%p1114_p13), %s229_s9, 4294965248  ;;  %v285_v0 = vld [vmem:[%s1011_s11 + $0x8] sm:$0xff]  ;;  %v284_v1 = vld [vmem:[%s1011_s11] sm:$0xff]  ;;  %s572_s24 = sshll.u32 %s803_s20, 1  ;;  %v408_v50 = vlaneseq  ;;  %s400_s26 = sld [smem:[#allocation3]] }
  0x5f   : > { %v301_v2 = vunpack.c.l.s8.bf16 %v285_v0  ;;  %v303_v3 = vunpack.c.h.s8.bf16 %v285_v0  ;;  %v300_v4 = vunpack.c.l.s8.bf16 %v284_v1  ;;  %v287_v5 = vld [vmem:[%s1011_s11 + $0x18] sm:$0xff]  ;;  %v302_v7 = vunpack.c.h.s8.bf16 %v284_v1  ;;  %v286_v9 = vld [vmem:[%s1011_s11 + $0x10] sm:$0xff]  ;;  %v289_v12 = vld [vmem:[%s1011_s11 + $0x28] sm:$0xff]  ;;  %p264_p4 = scmp.lt.s32.totalorder %s572_s24, 3  ;;  %s571_s16 = sshll.u32 %s1007_s5, 5 }
  0x60   : > { %v666_v6 = vld [vmem:[#allocation4 + $0x4] ss:$8 sps:$4 sm:$0xff]   ;;  %v305_v8 = vunpack.c.l.s8.bf16 %v287_v5  ;;  %v304_v10 = vunpack.c.l.s8.bf16 %v286_v9  ;;  %v307_v11 = vunpack.c.h.s8.bf16 %v287_v5  ;;  %v306_v13 = vunpack.c.h.s8.bf16 %v286_v9  ;;  %v288_v15 = vld [vmem:[%s1011_s11 + $0x20] sm:$0xff]  ;;  %v293_v24 = vld [vmem:[%s1011_s11 + $0x48] sm:$0xff]  ;;  %s582_s0 = sshll.u32 %s803_s20, 8  ;;  %s258_s30 = scalar_lea.vmem [#allocation9], %s571_s16 }
  0x61   : > { %342 = vmatprep.subr.bf16.mxu0 %v301_v2  ;;  %374 = vmatprep.mubr.bf16.mxu0 %v666_v6  ;;  %v309_v14 = vunpack.c.l.s8.bf16 %v289_v12  ;;  %v308_v16 = vunpack.c.l.s8.bf16 %v288_v15  ;;  %v311_v17 = vunpack.c.h.s8.bf16 %v289_v12  ;;  %v291_v18 = vld [vmem:[%s1011_s11 + $0x38] sm:$0xff]  ;;  %v310_v19 = vunpack.c.h.s8.bf16 %v288_v15  ;;  %v290_v21 = vld [vmem:[%s1011_s11 + $0x30] sm:$0xff]  ;;  %v292_v27 = vld [vmem:[%s1011_s11 + $0x40] sm:$0xff]  ;;  %s1125_s24 = smov (!%p264_p4, %s572_s24), 3  ;;  %s443_s12 = sshll.u32 %s258_s30, 4  ;;  %s1044_s12 = int_to_ptr.vmem [resolvable:$true] %s443_s12 }
  0x62   : > { %343 = vmatpush1.bf16.xpose.msra.mxu0 %v300_v4  ;;  %v313_v20 = vunpack.c.l.s8.bf16 %v291_v18  ;;  %v312_v22 = vunpack.c.l.s8.bf16 %v290_v21  ;;  %v315_v23 = vunpack.c.h.s8.bf16 %v291_v18  ;;  %v314_v25 = vunpack.c.h.s8.bf16 %v290_v21  ;;  %v295_v30 = vld [vmem:[%s1011_s11 + $0x58] sm:$0xff]  ;;  %v294_v33 = vld [vmem:[%s1011_s11 + $0x50] sm:$0xff]  ;;  %v297_v36 = vld [vmem:[%s1011_s11 + $0x68] sm:$0xff]  ;;  %s266_s15 = scalar_lea.vmem %s1096_s3, %s1125_s24  ;;  %s1042_s23 = scalar_lea.hbm %s1097_s4, %s582_s0 }
  0x63   : > { %344 = vmatprep.subr.bf16.mxu0 %v303_v3  ;;  %v317_v26 = vunpack.c.l.s8.bf16 %v293_v24  ;;  %v316_v28 = vunpack.c.l.s8.bf16 %v292_v27  ;;  %v319_v29 = vunpack.c.h.s8.bf16 %v293_v24  ;;  %v318_v31 = vunpack.c.h.s8.bf16 %v292_v27  ;;  %v296_v39 = vld [vmem:[%s1011_s11 + $0x60] sm:$0xff]  ;;  %v299_v42 = vld [vmem:[%s1011_s11 + $0x78] sm:$0xff]  ;;  %v298_v45 = vld [vmem:[%s1011_s11 + $0x70] sm:$0xff]  ;;  %s427_s20 = scalar_lea.sflag [#allocation6], %s1007_s5  ;;  %s725_s29 = scalar_lea.vmem %s1044_s12, 512 }
  0x64   : > { %v321_v32 = vunpack.c.l.s8.bf16 %v295_v30  ;;  %v320_v34 = vunpack.c.l.s8.bf16 %v294_v33  ;;  %v323_v35 = vunpack.c.h.s8.bf16 %v295_v30  ;;  %v322_v37 = vunpack.c.h.s8.bf16 %v294_v33  ;;  %v664_v49 = vld [vmem:[#allocation4] ss:$8 sps:$4 sm:$0xff]   ;;  %p726_p6 = scmp.ne.s32.totalorder %s1044_s12, %s725_s29  ;;  %s819_s7 = smov [#allocation9]  }
  0x65   : > { %v325_v38 = vunpack.c.l.s8.bf16 %v297_v36  ;;  %v324_v40 = vunpack.c.l.s8.bf16 %v296_v39  ;;  %v327_v41 = vunpack.c.h.s8.bf16 %v297_v36  ;;  %v326_v43 = vunpack.c.h.s8.bf16 %v296_v39  ;;  %v406_v53 = vld [vmem:[%s266_s15] sm:$0x3]  ;;  %s729_s9 = sshll.u32 %s819_s7, 4  ;;  %s730_s9 = int_to_ptr.vmem [resolvable:$false] %s729_s9 }
  0x66   : > { %v329_v44 = vunpack.c.l.s8.bf16 %v299_v42  ;;  %v328_v46 = vunpack.c.l.s8.bf16 %v298_v45  ;;  %v331_v47 = vunpack.c.h.s8.bf16 %v299_v42  ;;  %v330_v48 = vunpack.c.h.s8.bf16 %v298_v45  ;;  %p727_p8 = pnand %p726_p6, %p947_p10  ;;  %s731_s11 = scalar_lea.vmem %s730_s9, 1024 }
  0x67   : > { %v409_v51 = vshrl.u32 %v408_v50, 7  ;;  %v401_v56 = vstv %s400_s26  ;;  %p732_p11 = scmp.lt.s32.totalorder %s1044_s12, %s730_s9  ;;  %p733_p0 = scmp.lt.s32.totalorder %s731_s11, %s725_s29 }
  0x68   : > { %p728_p12 = pneg %p727_p8 }
  0x69   : > { %v410_v52 = vsub.s32 0, %v409_v51  ;;  %v414_v54 = vsub.s32 1, %v409_v51  ;;  %p734_p5 = por %p733_p0, %p732_p11 }
  0x6a   : > { %345 = vmatpush1.bf16.xpose.msra.mxu0 %v302_v7 }
  0x6b   : > { %346 = vmatprep.subr.bf16.mxu0 %v305_v8  ;;  %v411_v57 = vrot.slane %v406_v53, %v410_v52  ;;  %v415_v59 = vrot.slane %v406_v53, %v414_v54  ;;  %p735_p9 = pnand %p734_p5, %p728_p12 }
  0x72   : > { %347 = vmatpush1.bf16.xpose.msra.mxu0 %v304_v10 }
  0x73   : > { %348 = vmatprep.subr.bf16.mxu0 %v307_v11 }
  0x7a   : > { %349 = vmatpush1.bf16.xpose.msra.mxu0 %v306_v13 }
  0x7b   : > { %350 = vmatprep.subr.bf16.mxu0 %v309_v14 }
  0x82   : > { %351 = vmatpush1.bf16.xpose.msra.mxu0 %v308_v16 }
  0x83   : > { %352 = vmatprep.subr.bf16.mxu0 %v311_v17 }
  0x8a   : > { %353 = vmatpush1.bf16.xpose.msra.mxu0 %v310_v19 }
  0x8b   : > { %354 = vmatprep.subr.bf16.mxu0 %v313_v20 }
  0x92   : > { %355 = vmatpush1.bf16.xpose.msra.mxu0 %v312_v22 }
  0x93   : > { %356 = vmatprep.subr.bf16.mxu0 %v315_v23 }
  0x9a   : > { %357 = vmatpush1.bf16.xpose.msra.mxu0 %v314_v25 }
  0x9b   : > { %358 = vmatprep.subr.bf16.mxu0 %v317_v26 }
  0xa2   : > { %359 = vmatpush1.bf16.xpose.msra.mxu0 %v316_v28 }
  0xa3   : > { %360 = vmatprep.subr.bf16.mxu0 %v319_v29 }
  0xaa   : > { %361 = vmatpush1.bf16.xpose.msra.mxu0 %v318_v31 }
  0xab   : > { %362 = vmatprep.subr.bf16.mxu0 %v321_v32 }
  0xb2   : > { %363 = vmatpush1.bf16.xpose.msra.mxu0 %v320_v34 }
  0xb3   : > { %364 = vmatprep.subr.bf16.mxu0 %v323_v35 }
  0xba   : > { %365 = vmatpush1.bf16.xpose.msra.mxu0 %v322_v37 }
  0xbb   : > { %366 = vmatprep.subr.bf16.mxu0 %v325_v38 }
  0xc2   : > { %367 = vmatpush1.bf16.xpose.msra.mxu0 %v324_v40 }
  0xc3   : > { %368 = vmatprep.subr.bf16.mxu0 %v327_v41 }
  0xca   : > { %369 = vmatpush1.bf16.xpose.msra.mxu0 %v326_v43 }
  0xcb   : > { %370 = vmatprep.subr.bf16.mxu0 %v329_v44 }
  0xd2   : > { %371 = vmatpush1.bf16.xpose.msra.mxu0 %v328_v46 }
  0xd3   : > { %372 = vmatprep.subr.bf16.mxu0 %v331_v47 }
  0xda   : > { %373 = vmatpush1.bf16.xpose.msra.mxu0 %v330_v48 }
  0xe1   : > { %375 = vmatmul.mubr.bf16.vlgmr.msra.gmra.mrb[0].mxu0 %v664_v49 }
 0x1b4   : > { %v376_v55 = vpop.f32.mrb[0].mxu0 }
 0x1b5   : > { %v378_v58 = vpop.f32.mrb[1].mxu0  ;;  %v402_v61 = vmul.f32 %v401_v56, %v376_v55 }
 0x1b6   : > { %v380_v60 = vpop.f32.mrb[2].mxu0  ;;  %v403_v63 = vmul.f32 %v401_v56, %v378_v58 }
 0x1b7   : > { %v382_v62 = vpop.f32.mrb[3].mxu0  ;;  %v418_v0 = vadd.f32 %v411_v57, %v402_v61  ;;  %v404_v1 = vmul.f32 %v401_v56, %v380_v60 }
 0x1b8   : > { %v419_v2 = vadd.f32 %v415_v59, %v403_v63  ;;  %v405_v3 = vmul.f32 %v401_v56, %v382_v62 }
 0x1b9   : > { %422 = vst [vmem:[%s258_s30] sm:$0xff] %v418_v0  ;;  %v420_v4 = vadd.f32 %v411_v57, %v404_v1 }
 0x1ba   : > { %423 = vst [vmem:[%s258_s30 + $0x8] sm:$0xff] %v419_v2  ;;  %v421_v5 = vadd.f32 %v415_v59, %v405_v3 }
 0x1bb   : > { %424 = vst [vmem:[%s258_s30 + $0x10] sm:$0xff] %v420_v4 }
 0x1bc   : > { %425 = vst [vmem:[%s258_s30 + $0x18] sm:$0xff] %v421_v5 }
 0x1bd   : > { %738 = shalt.err (!%p735_p9)
}
 0x1be   : > { %s739_s24 = scalar_lea.hbm %s1042_s23, 512  ;;  %s743_s14 = scalar_lea.hbm %s1097_s4, 1024 }
 0x1bf   : > { %p740_p1 = scmp.ne.s32.totalorder %s1042_s23, %s739_s24  ;;  %p744_p7 = scmp.lt.u32.totalorder %s1042_s23, %s1097_s4 }
 0x1c0   : > { %p745_p13 = scmp.lt.u32.totalorder %s743_s14, %s739_s24  ;;  %p747_p6 = scmp.lt.u32.totalorder %s739_s24, %s1042_s23 }
 0x1c1   : > { %p741_p2 = pnand %p740_p1, %p947_p10 }
 0x1c2   : > { %p746_p4 = por %p745_p13, %p744_p7 }
 0x1c3   : > { %p742_p3 = pneg %p741_p2 }
 0x1c4   : > { %p748_p8 = por %p747_p6, %p746_p4 }
 0x1c6   : > { %p749_p12 = pnand %p748_p8, %p742_p3 }
 0x1c8   : > { %752 = shalt.err (!%p749_p12)
}
 0x1c9   : > { %s820_s0 = smov 256   ;;  %s821_s30 = smov 512  }
 0x1ca   : > { %s822_s13 = smov 16  }
 0x1cb   : > { %589 = dma.vmem_to_hbm [thread:$0]  (%p947_p10), %s1044_s12, 512, %s1042_s23, %s427_s20, %s820_s0, %s821_s30, %s822_s13  }
 0x1cc PF: > { %s458_s25 = sand.u32 1, %s791_s17   ;;  %p1115_p11 = scmp.ne.s32.totalorder %s1105_s27, 0 }
 0x1cd   : > { %p1116_p0 = scmp.ge.s32.totalorder %s811_s22, 2  ;;  %s459_s29 = scalar_lea.sflag [#allocation6], %s458_s25 }
 0x1cf   : > { %p600_p5 = pnand %p1116_p0, %p1115_p11 }
 0x1d1   : > { %786 = dma.done.wait (!%p600_p5), %s459_s29, 512  }
 0x1d2   : > { %788 = vsyncadd (!%p600_p5), %s459_s29, 4294966784  ;;  %s22_s22 = sadd.s32 1, %s811_s22   ;;  %s1117_s17 = smov %s795_s18 }
 0x1d3   : > { %p19_p9 = scmp.ge.s32.totalorder %s22_s22, 4   ;;  %s1118_s18 = smov %s799_s19 }
 0x1d4   : > { %s1119_s19 = smov %s956_s10  ;;  %s1120_s20 = smov %s807_s21 }
 0x1d5   : > { %s1121_s21 = smov %s1123_s6  ;;  %21 = sbr.rel (!%p19_p9) target bundleno = 9 (0x9), region = 94 }
 0x1dc   :  { %464 = vsyncpa [#allocation5], 1 }
 0x1dd   :  { %466 = vsyncpa [#allocation5 + $0x1], 1 }
 0x1de   :  { %467 = vsyncpa [#allocation8], 1 }
 0x1df   :  { %469 = vsyncpa [#allocation8 + $0x1], 1 }
 0x1e0   :  { %470 = vsyncpa [#allocation6], 1 }
 0x1e1   :  { %472 = vsyncpa [#allocation6 + $0x1], 1 }

</bundles_post_ra>
